<compile_context>
chip_gen: v5e
topology: v5e:2x2
jax: 0.10.0
libtpu: 0.0.40
codegen_flags: <defaults>
</compile_context>

<pallas_src>
import functools

import jax
import jax.numpy as jnp
from jax.experimental import pallas as pl
from jax.experimental.pallas import tpu as pltpu


def _round_up(x, m):
    return ((x + m - 1) // m) * m


def _head_kernel(x_ref, w_ref, b_ref, o_ref):
    # bf16 x/w on the MXU, f32 accumulation.
    logits = jnp.dot(x_ref[...], w_ref[...], preferred_element_type=jnp.float32)
    logits = logits + b_ref[...]  # (TB, Cp) + (1, Cp); padded cols carry -inf bias
    # Numerically-stable softmax over the class (last / lane) axis == torch dim=1.
    m = jnp.max(logits, axis=-1, keepdims=True)
    e = jnp.exp(logits - m)  # padded cols: exp(-inf) == 0 -> zero probability
    denom = jnp.sum(e, axis=-1, keepdims=True)
    o_ref[...] = (e * pl.reciprocal(denom, approx=True)).astype(o_ref.dtype)


@functools.partial(jax.jit, static_argnames=("block_b",))
def transformer_basic_head(x, w, b, *, block_b=256):
    """x: (B, dim_in), w: (dim_in, num_classes) [= nn.Linear weight transposed],
    b: (num_classes,).  Returns softmax(x @ w + b, axis=1) (eval-mode forward)."""
    B, dim_in = x.shape
    num_classes = w.shape[1]
    out_dtype = x.dtype

    # Lane-dense class axis: pad to a multiple of 128.
    c_pad = _round_up(max(num_classes, 128), 128)
    # Batch tile: multiple of 8 sublanes, capped at block_b (VMEM-friendly on v7x).
    tb = min(block_b, _round_up(B, 8))
    b_pad = _round_up(B, tb)

    # bf16 inputs/weights for the MXU + halved DMA; padded rows/cols are zero,
    # padded bias entries are -inf so padded classes vanish under softmax.
    x_p = jnp.zeros((b_pad, dim_in), jnp.bfloat16).at[:B, :].set(x.astype(jnp.bfloat16))
    w_p = jnp.zeros((dim_in, c_pad), jnp.bfloat16).at[:, :num_classes].set(
        w.astype(jnp.bfloat16))
    b_p = jnp.full((1, c_pad), -jnp.inf, jnp.float32).at[0, :num_classes].set(
        b.astype(jnp.float32))

    cost = pl.CostEstimate(
        flops=2 * b_pad * dim_in * c_pad,
        transcendentals=b_pad * c_pad,  # exp
        bytes_accessed=(x_p.size * 2 + w_p.size * 2 + b_p.size * 4
                        + b_pad * c_pad * 4),
    )

    out = pl.pallas_call(
        _head_kernel,
        out_shape=jax.ShapeDtypeStruct((b_pad, c_pad), out_dtype),
        grid=(b_pad // tb,),
        in_specs=[
            pl.BlockSpec((tb, dim_in), lambda i: (i, 0)),     # x tile marches over batch
            pl.BlockSpec((dim_in, c_pad), lambda i: (0, 0)),  # weight resident in VMEM
            pl.BlockSpec((1, c_pad), lambda i: (0, 0)),       # bias resident in VMEM
        ],
        out_specs=pl.BlockSpec((tb, c_pad), lambda i: (i, 0)),
        compiler_params=pltpu.CompilerParams(
            dimension_semantics=("parallel",),  # shard batch tiles across TCs (v7x)
        ),
        cost_estimate=cost,
    )(x_p, w_p, b_p)

    # Strip batch/class padding.
    return out[:B, :num_classes]


if __name__ == "__main__":
    # Module config (synthetic, deterministic init — no checkpoint load).
    batch = 8
    dim_in = 32
    num_classes = 16

    key = jax.random.PRNGKey(0)
    kx, kw, kb = jax.random.split(key, 3)

    x = jax.random.normal(kx, (batch, dim_in), dtype=jnp.float32)
    # nn.Linear params: weight (num_classes, dim_in), bias (num_classes,);
    # stored transposed as (dim_in, num_classes) for the kernel.
    w = jax.random.normal(kw, (dim_in, num_classes), dtype=jnp.float32) * 0.02
    b = jax.random.normal(kb, (num_classes,), dtype=jnp.float32) * 0.01

    out = transformer_basic_head(x, w, b)
    out = jax.block_until_ready(out)

    # Reference: same bf16 input/weight cast, f32 math (isolates the approx-recip error).
    xb = x.astype(jnp.bfloat16).astype(jnp.float32)
    wb = w.astype(jnp.bfloat16).astype(jnp.float32)
    ref = jax.nn.softmax(xb @ wb + b[None, :], axis=1)

    assert out.shape == (batch, num_classes)
    assert jnp.allclose(out, ref, atol=3e-3, rtol=3e-3), "mismatch vs reference"
    # Sanity: rows still sum to ~1 after slicing off the padded (zero-prob) classes.
    assert jnp.allclose(jnp.sum(out, axis=1), 1.0, atol=3e-3), "rows do not sum to 1"

    print("KERNEL_OK")
</pallas_src>

<mosaic_0001>
module attributes {stable_mosaic.version = 11 : i64} {
  func.func @_head_kernel(%arg0: i32, %arg1: memref<8x32xbf16, #tpu.memory_space<vmem>>, %arg2: memref<32x128xbf16, #tpu.memory_space<vmem>>, %arg3: memref<1x128xf32, #tpu.memory_space<vmem>>, %arg4: memref<8x128xf32, #tpu.memory_space<vmem>>) attributes {dimension_semantics = [#tpu.dimension_semantics<parallel>], iteration_bounds = array<i64: 1>, scalar_prefetch = 0 : i64, scratch_operands = 0 : i64, tpu.core_type = #tpu.core_type<tc>, window_params = [{transform_indices = @transform_0, window_bounds = array<i64: 8, 32>}, {pipeline_mode = #tpu.pipeline_mode<synchronous>, transform_indices = @transform_1, window_bounds = array<i64: 32, 128>}, {pipeline_mode = #tpu.pipeline_mode<synchronous>, transform_indices = @transform_2, window_bounds = array<i64: 1, 128>}, {transform_indices = @transform_3, window_bounds = array<i64: 8, 128>}]} {
    %c0 = arith.constant 0 : index
    %c0_0 = arith.constant 0 : index
    %0 = vector.load %arg1[%c0, %c0_0] : memref<8x32xbf16, #tpu.memory_space<vmem>>, vector<8x32xbf16>
    %c0_1 = arith.constant 0 : index
    %c0_2 = arith.constant 0 : index
    %1 = vector.load %arg2[%c0_1, %c0_2] : memref<32x128xbf16, #tpu.memory_space<vmem>>, vector<32x128xbf16>
    %cst = arith.constant dense<0.000000e+00> : vector<8x128xf32>
    %2 = tpu.matmul %0, %1, %cst {dimension_numbers = #tpu.dot_dimension_numbers<[1], [0], [0], [1], [0, 0, 1, 1], [], []>} : vector<8x32xbf16>, vector<32x128xbf16>, vector<8x128xf32> -> vector<8x128xf32>
    %c0_3 = arith.constant 0 : index
    %c0_4 = arith.constant 0 : index
    %3 = vector.load %arg3[%c0_3, %c0_4] : memref<1x128xf32, #tpu.memory_space<vmem>>, vector<1x128xf32>
    %4 = vector.broadcast %3 : vector<1x128xf32> to vector<8x128xf32>
    %5 = arith.addf %2, %4 : vector<8x128xf32>
    %cst_5 = arith.constant dense<0xFF800000> : vector<8xf32>
    %6 = vector.multi_reduction <maximumf>, %5, %cst_5 [1] : vector<8x128xf32> to vector<8xf32>
    %7 = vector.shape_cast %6 : vector<8xf32> to vector<8x1xf32>
    %8 = vector.broadcast %7 : vector<8x1xf32> to vector<8x128xf32>
    %9 = arith.subf %5, %8 : vector<8x128xf32>
    %10 = math.exp %9 : vector<8x128xf32>
    %cst_6 = arith.constant dense<0.000000e+00> : vector<8xf32>
    %11 = vector.multi_reduction <add>, %10, %cst_6 [1] : vector<8x128xf32> to vector<8xf32>
    %12 = vector.shape_cast %11 : vector<8xf32> to vector<8x1xf32>
    %13 = tpu.reciprocal %12 {approx = true} : vector<8x1xf32> -> vector<8x1xf32>
    %14 = vector.broadcast %13 : vector<8x1xf32> to vector<8x128xf32>
    %15 = arith.mulf %10, %14 : vector<8x128xf32>
    %c0_7 = arith.constant 0 : index
    %c0_8 = arith.constant 0 : index
    %16 = vector.load %arg4[%c0_7, %c0_8] : memref<8x128xf32, #tpu.memory_space<vmem>>, vector<8x128xf32>
    tpu.vector_store %arg4[%c0_7, %c0_8], %15 {strides = array<i32>} : memref<8x128xf32, #tpu.memory_space<vmem>>, vector<8x128xf32>,
    return
  }
  func.func @transform_0(%arg0: i32) -> (i32, i32) {
    %c0_i32 = arith.constant 0 : i32
    %c0_i32_0 = arith.constant 0 : i32
    return %arg0, %c0_i32 : i32, i32
  }
  func.func @transform_1(%arg0: i32) -> (i32, i32) {
    %c0_i32 = arith.constant 0 : i32
    %c0_i32_0 = arith.constant 0 : i32
    %c0_i32_1 = arith.constant 0 : i32
    return %c0_i32, %c0_i32_0 : i32, i32
  }
  func.func @transform_2(%arg0: i32) -> (i32, i32) {
    %c0_i32 = arith.constant 0 : i32
    %c0_i32_0 = arith.constant 0 : i32
    %c0_i32_1 = arith.constant 0 : i32
    return %c0_i32, %c0_i32_0 : i32, i32
  }
  func.func @transform_3(%arg0: i32) -> (i32, i32) {
    %c0_i32 = arith.constant 0 : i32
    %c0_i32_0 = arith.constant 0 : i32
    return %arg0, %c0_i32 : i32, i32
  }
}

</mosaic_0001>

<bundles_post_ra>
// kernel: transformer_basic_head.1
= control target key start
LH: loop header
LB: loop body
LE: loop exit
PB: predicated region body
PF: predicated region fallthrough
CT: control target
= control target key end

     0   :  { %s159_s0 = inlined_call_operand.vmem [shape: bf16[8,32], index: 0, kind: input, shape index: {}]   ;;  %s160_s1 = inlined_call_operand.vmem [shape: bf16[32,128], index: 1, kind: input, shape index: {}]   ;;  %s161_s2 = inlined_call_operand.vmem [shape: f32[1,128], index: 2, kind: input, shape index: {}]   ;;  %s162_s3 = inlined_call_operand.hbm [shape: f32[8,128], index: 3, kind: output, shape index: {}]  }
   0x1   :  { %v90_v0 = vld [vmem:[%s160_s1 + $0x8] sm:$0xff] }
   0x2   :  { %8 = vsyncpa [#allocation3], 0  ;;  %47 = vmatpush.bf16.msra.mxu0 %v90_v0  ;;  %v89_v1 = vld [vmem:[%s160_s1] sm:$0xff]  ;;  %vm37_vm0 = vcmask 261120   ;;  %s123_s1 = smov [#allocation2]   ;;  %s71_s22 = sshll.u32 %s162_s3, 4  ;;  %s72_s22 = int_to_ptr.hbm [resolvable:$true] %s71_s22 }
   0x3   :  { %v16_v2 = vld [vmem:[%s159_s0] sm:$0xf]  ;;  %s69_s0 = sshll.u32 %s123_s1, 4  ;;  %s70_s0 = int_to_ptr.vmem [resolvable:$true] %s69_s0 }
   0x4   :  { %v92_v3 = vld [vmem:[%s161_s2] ss:$0 sm:$0xff] }
   0x6   :  { %48 = vmatpush.bf16.msra.mxu0 %v89_v1 }
   0x9   :  { %88 = vmatmul.msk.bf16.vlgmr.msra.gmra.mxu0 %vm37_vm0, %v16_v2 }
  0x86   :  { %v50_v4 = vpop.f32.mrf.mxu0 }
  0x87   :  { %v51_v5 = vadd.f32 %v92_v3, %v50_v4 }
  0x89   :  { %54 = vmax.xlane.f32.xlu0 %v51_v5 }
  0x8e   :  { %v52_v6 = vpop.f32.mrf.mxu0 }
  0xfc   :  { %v55_v7 = vpop.xlane.xlu0 %54 }
  0xfd   :  { %v56_v8 = vsub.f32 %v51_v5, %v55_v7 }
  0xff   :  { %v57_v9 = vmul.f32 1.442695, %v56_v8 }
 0x101   :  { %93 = vpow2.f32 %v57_v9 }
 0x107   :  { %v94_v10 = vpop.eup %93 }
 0x108   :  { %59 = vadd.xlane.f32.xlu0 %v94_v10 }
 0x17b   :  { %v60_v11 = vpop.xlane.xlu0 %59 }
 0x17c   :  { %95 = vrcp.f32 %v60_v11 }
 0x182   :  { %v96_v12 = vpop.eup %95 }
 0x183   :  { %v62_v13 = vmul.f32 %v96_v12, %v94_v10 }
 0x185   :  { %63 = vst [vmem:[#allocation2] sm:$0xff] %v62_v13 }
 0x186   :  { %74 = dma.vmem_to_hbm [thread:$0]  %s70_s0, 128, %s72_s22, [#allocation3]  }
 0x187   :  { %121 = dma.done.wait [#allocation3], 128  }
 0x188   :  { %122 = vsyncadd [#allocation3], 4294967168 }
 0x189   :  { %79 = vsyncpa [#allocation3], 1 }

</bundles_post_ra>
